<compile_context>
chip_gen: v7x
topology: tpu7x:2x2x1
jax: 0.10.0
libtpu: 0.0.40
codegen_flags: <defaults>
</compile_context>

<pallas_src>
import jax
import jax.numpy as jnp
from jax.experimental import pallas as pl
from jax.experimental.pallas import tpu as pltpu


def _round_up(x: int, m: int) -> int:
    return ((x + m - 1) // m) * m


def lora_mlp_kernel(x_ref, wa_ref, wb_ref, base_ref, o_ref):
    # x_ref:    (tm, Dp)   compute dtype
    # wa_ref:   (Dp, Hp)   compute dtype
    # wb_ref:   (Hp, Dp)   compute dtype
    # base_ref: (1, Dp)    f32
    # o_ref:    (tm, Dp)   x.dtype
    h = jnp.tanh(
        jnp.dot(x_ref[...], wa_ref[...], preferred_element_type=jnp.float32)
    )
    y = jnp.dot(
        h.astype(wb_ref.dtype), wb_ref[...], preferred_element_type=jnp.float32
    )
    o_ref[...] = (y + base_ref[...]).astype(o_ref.dtype)


def prepare_lora_params(w_a, w_b, base, *, compute_dtype=None):
    """Cast + lane-dense pad the static parameters once, outside the per-call path.

    compute_dtype: dtype for matmul operands (e.g. jnp.bfloat16 halves HBM
    traffic and doubles MXU throughput). Defaults to w_a.dtype (numerics
    unchanged). Accumulation inside the kernel is always f32.
    """
    dim, H = w_a.shape
    Dp, Hp = _round_up(dim, 128), _round_up(H, 128)
    cd = jnp.dtype(compute_dtype) if compute_dtype is not None else w_a.dtype

    wa = w_a if w_a.dtype == cd else w_a.astype(cd)
    wb = w_b if w_b.dtype == cd else w_b.astype(cd)
    if (Dp, Hp) != (dim, H):
        wa = jnp.pad(wa, ((0, Dp - dim), (0, Hp - H)))
        wb = jnp.pad(wb, ((0, Hp - H), (0, Dp - dim)))

    b2 = base.reshape(1, dim).astype(jnp.float32)  # base add stays f32
    if Dp != dim:
        b2 = jnp.pad(b2, ((0, 0), (0, Dp - dim)))
    return wa, wb, b2


def _build_call(Mp, Dp, Hp, tm_eff, out_dtype, vmem_limit, cost,
                single_buffer_weights):
    def const_spec(shape):
        # Constant index_map => operand is DMA'd once and stays resident.
        if single_buffer_weights:
            return pl.BlockSpec(shape, lambda i: (0,) * len(shape),
                                pipeline_mode=pl.Buffered(1))
        return pl.BlockSpec(shape, lambda i: (0,) * len(shape))

    return pl.pallas_call(
        lora_mlp_kernel,
        out_shape=jax.ShapeDtypeStruct((Mp, Dp), out_dtype),
        grid_spec=pltpu.PrefetchScalarGridSpec(
            num_scalar_prefetch=0,
            grid=(Mp // tm_eff,),
            in_specs=[
                pl.BlockSpec((tm_eff, Dp), lambda i: (i, 0)),  # x rows (pipelined)
                const_spec((Dp, Hp)),                          # W_a (resident)
                const_spec((Hp, Dp)),                          # W_b (resident)
                const_spec((1, Dp)),                           # base (broadcast)
            ],
            out_specs=pl.BlockSpec((tm_eff, Dp), lambda i: (i, 0)),
        ),
        compiler_params=pltpu.CompilerParams(
            dimension_semantics=("parallel",),   # megacore sharding on v7x
            vmem_limit_bytes=vmem_limit,
        ),
        cost_estimate=cost,
    )


def lora_mlp_forward(x, params, *, tm=256):
    """x: (B, T, dim). params: output of prepare_lora_params(W_a, W_b, base)."""
    wa, wb, base2 = params
    B, T, dim = x.shape
    Dp, Hp = wa.shape
    M = B * T
    cd = wa.dtype           # matmul-operand dtype
    out_dtype = x.dtype     # kernel writes output in x.dtype directly

    cd_b = jnp.dtype(cd).itemsize
    od_b = jnp.dtype(out_dtype).itemsize

    # Row tile: tiny M only rounds up to the sublane pack; for M >= 256 ensure
    # at least two grid steps so the "parallel" axis engages both v7x cores.
    sub = 16 if cd_b == 2 else 8
    if M < 256:
        tm_eff = _round_up(M, sub)
        Mp = tm_eff
    else:
        tm_eff = min(tm, 256)
        Mp = _round_up(M, tm_eff)
        if Mp // tm_eff < 2:
            tm_eff = max(128, tm_eff // 2)
            Mp = _round_up(M, tm_eff)

    # Only pad / cast x when actually needed (no-op passes are skipped).
    x2 = x.reshape(M, dim)
    if x2.dtype != cd:
        x2 = x2.astype(cd)
    if (Mp, Dp) != (M, dim):
        x2 = jnp.pad(x2, ((0, Mp - M), (0, Dp - dim)))

    # VMEM budget from actual buffer sizes (2x x-tile, 2x out-tile, weights
    # possibly double-buffered, base) + slack, capped below v7x's 64 MiB.
    w_bytes = (Dp * Hp + Hp * Dp) * cd_b
    tile_bytes = tm_eff * Dp * (cd_b + od_b)          # one x tile + one out tile
    vmem_need = 2 * tile_bytes + 2 * w_bytes + 2 * Dp * 4
    vmem_limit = int(min(max(vmem_need + (4 << 20), 16 << 20), 56 << 20))

    cost = pl.CostEstimate(
        flops=2 * 2 * Mp * Dp * Hp,                   # two matmuls
        transcendentals=Mp * Hp,                      # tanh
        bytes_accessed=Mp * Dp * (cd_b + od_b) + w_bytes + Dp * 4,
    )

    try:
        out = _build_call(Mp, Dp, Hp, tm_eff, out_dtype, vmem_limit, cost,
                          single_buffer_weights=True)(x2, wa, wb, base2)
    except Exception:
        # pipeline_mode=pl.Buffered(1) unsupported here -> default buffering.
        out = _build_call(Mp, Dp, Hp, tm_eff, out_dtype, vmem_limit, cost,
                          single_buffer_weights=False)(x2, wa, wb, base2)

    if (Mp, Dp) == (M, dim):
        return out.reshape(B, T, dim)
    return out[:M, :dim].reshape(B, T, dim)


if __name__ == "__main__":
    key = jax.random.PRNGKey(0)
    kx, ka, kb, kbase, kx2, ka2, kb2, kbase2 = jax.random.split(key, 8)

    # --- Check 1: module-sized shapes, f32 end-to-end (numerics unchanged) ---
    B, T, dim, dim_hidden = 2, 8, 32, 16
    x = jax.random.normal(kx, (B, T, dim), dtype=jnp.float32)
    w_a = jax.random.normal(ka, (dim, dim_hidden), dtype=jnp.float32) * 0.1
    w_b = jax.random.normal(kb, (dim_hidden, dim), dtype=jnp.float32) * 0.1
    base = jax.random.normal(kbase, (1, 1, dim), dtype=jnp.float32) * 0.1

    params = prepare_lora_params(w_a, w_b, base)           # f32 compute
    out = jax.block_until_ready(lora_mlp_forward(x, params))
    ref = base + jnp.tanh(x @ w_a) @ w_b
    assert out.shape == (B, T, dim) and out.dtype == x.dtype
    assert jnp.allclose(out, ref, atol=1e-2, rtol=1e-2), "f32 path mismatch"

    # --- Check 2: bf16 opt-in path, lane-dense dim, multi-step grid ---------
    B2, T2, dim2, H2 = 4, 96, 256, 64       # M = 384 -> 2 grid steps
    xb = jax.random.normal(kx2, (B2, T2, dim2), dtype=jnp.bfloat16)
    w_ab = jax.random.normal(ka2, (dim2, H2), dtype=jnp.float32) * 0.05
    w_bb = jax.random.normal(kb2, (H2, dim2), dtype=jnp.float32) * 0.05
    baseb = jax.random.normal(kbase2, (1, 1, dim2), dtype=jnp.float32) * 0.1

    paramsb = prepare_lora_params(w_ab, w_bb, baseb, compute_dtype=jnp.bfloat16)
    outb = jax.block_until_ready(lora_mlp_forward(xb, paramsb))
    xf = xb.astype(jnp.float32)
    refb = baseb + jnp.tanh(xf @ w_ab) @ w_bb
    assert outb.shape == (B2, T2, dim2) and outb.dtype == jnp.bfloat16
    assert jnp.allclose(outb.astype(jnp.float32), refb, atol=5e-2, rtol=5e-2), \
        "bf16 path mismatch"

    print("KERNEL_OK")
</pallas_src>

<mosaic_0001>
module attributes {stable_mosaic.version = 11 : i64} {
  func.func @lora_mlp_kernel(%arg0: i32, %arg1: memref<16x128xf32, #tpu.memory_space<vmem>>, %arg2: memref<128x128xf32, #tpu.memory_space<vmem>>, %arg3: memref<128x128xf32, #tpu.memory_space<vmem>>, %arg4: memref<1x128xf32, #tpu.memory_space<vmem>>, %arg5: memref<16x128xf32, #tpu.memory_space<vmem>>) attributes {dimension_semantics = [#tpu.dimension_semantics<parallel>], iteration_bounds = array<i64: 1>, scalar_prefetch = 0 : i64, scratch_operands = 0 : i64, tpu.core_type = #tpu.core_type<tc>, window_params = [{transform_indices = @transform_0, window_bounds = array<i64: 16, 128>}, {pipeline_mode = #tpu.pipeline_mode<synchronous>, transform_indices = @transform_1, window_bounds = array<i64: 128, 128>}, {pipeline_mode = #tpu.pipeline_mode<synchronous>, transform_indices = @transform_2, window_bounds = array<i64: 128, 128>}, {pipeline_mode = #tpu.pipeline_mode<synchronous>, transform_indices = @transform_3, window_bounds = array<i64: 1, 128>}, {transform_indices = @transform_4, window_bounds = array<i64: 16, 128>}]} {
    %c0 = arith.constant 0 : index
    %c0_0 = arith.constant 0 : index
    %0 = vector.load %arg1[%c0, %c0_0] : memref<16x128xf32, #tpu.memory_space<vmem>>, vector<16x128xf32>
    %c0_1 = arith.constant 0 : index
    %c0_2 = arith.constant 0 : index
    %1 = vector.load %arg2[%c0_1, %c0_2] : memref<128x128xf32, #tpu.memory_space<vmem>>, vector<128x128xf32>
    %cst = arith.constant dense<0.000000e+00> : vector<16x128xf32>
    %2 = tpu.matmul %0, %1, %cst {dimension_numbers = #tpu.dot_dimension_numbers<[1], [0], [0], [1], [0, 0, 1, 1], [], []>} : vector<16x128xf32>, vector<128x128xf32>, vector<16x128xf32> -> vector<16x128xf32>
    %3 = math.tanh %2 : vector<16x128xf32>
    %c0_3 = arith.constant 0 : index
    %c0_4 = arith.constant 0 : index
    %4 = vector.load %arg3[%c0_3, %c0_4] : memref<128x128xf32, #tpu.memory_space<vmem>>, vector<128x128xf32>
    %cst_5 = arith.constant dense<0.000000e+00> : vector<16x128xf32>
    %5 = tpu.matmul %3, %4, %cst_5 {dimension_numbers = #tpu.dot_dimension_numbers<[1], [0], [0], [1], [0, 0, 1, 1], [], []>} : vector<16x128xf32>, vector<128x128xf32>, vector<16x128xf32> -> vector<16x128xf32>
    %c0_6 = arith.constant 0 : index
    %c0_7 = arith.constant 0 : index
    %6 = vector.load %arg4[%c0_6, %c0_7] : memref<1x128xf32, #tpu.memory_space<vmem>>, vector<1x128xf32>
    %7 = vector.broadcast %6 : vector<1x128xf32> to vector<16x128xf32>
    %8 = arith.addf %5, %7 : vector<16x128xf32>
    %c0_8 = arith.constant 0 : index
    %c0_9 = arith.constant 0 : index
    %9 = vector.load %arg5[%c0_8, %c0_9] : memref<16x128xf32, #tpu.memory_space<vmem>>, vector<16x128xf32>
    tpu.vector_store %arg5[%c0_8, %c0_9], %8 {strides = array<i32>} : memref<16x128xf32, #tpu.memory_space<vmem>>, vector<16x128xf32>,
    return
  }
  func.func @transform_0(%arg0: i32) -> (i32, i32) {
    %c0_i32 = arith.constant 0 : i32
    %c0_i32_0 = arith.constant 0 : i32
    return %arg0, %c0_i32 : i32, i32
  }
  func.func @transform_1(%arg0: i32) -> (i32, i32) {
    %c0_i32 = arith.constant 0 : i32
    %c0_i32_0 = arith.constant 0 : i32
    %c0_i32_1 = arith.constant 0 : i32
    return %c0_i32, %c0_i32_0 : i32, i32
  }
  func.func @transform_2(%arg0: i32) -> (i32, i32) {
    %c0_i32 = arith.constant 0 : i32
    %c0_i32_0 = arith.constant 0 : i32
    %c0_i32_1 = arith.constant 0 : i32
    return %c0_i32, %c0_i32_0 : i32, i32
  }
  func.func @transform_3(%arg0: i32) -> (i32, i32) {
    %c0_i32 = arith.constant 0 : i32
    %c0_i32_0 = arith.constant 0 : i32
    %c0_i32_1 = arith.constant 0 : i32
    return %c0_i32, %c0_i32_0 : i32, i32
  }
  func.func @transform_4(%arg0: i32) -> (i32, i32) {
    %c0_i32 = arith.constant 0 : i32
    %c0_i32_0 = arith.constant 0 : i32
    return %arg0, %c0_i32 : i32, i32
  }
}

module attributes {stable_mosaic.version = 11 : i64} {
  func.func @lora_mlp_kernel(%arg0: i32, %arg1: memref<16x128xf32, #tpu.memory_space<vmem>>, %arg2: memref<128x128xf32, #tpu.memory_space<vmem>>, %arg3: memref<128x128xf32, #tpu.memory_space<vmem>>, %arg4: memref<1x128xf32, #tpu.memory_space<vmem>>, %arg5: memref<16x128xf32, #tpu.memory_space<vmem>>) attributes {dimension_semantics = [#tpu.dimension_semantics<parallel>], iteration_bounds = array<i64: 1>, scalar_prefetch = 0 : i64, scratch_operands = 0 : i64, tpu.core_type = #tpu.core_type<tc>, window_params = [{transform_indices = @transform_0, window_bounds = array<i64: 16, 128>}, {pipeline_mode = #tpu.pipeline_mode<synchronous>, transform_indices = @transform_1, window_bounds = array<i64: 128, 128>}, {pipeline_mode = #tpu.pipeline_mode<synchronous>, transform_indices = @transform_2, window_bounds = array<i64: 128, 128>}, {pipeline_mode = #tpu.pipeline_mode<synchronous>, transform_indices = @transform_3, window_bounds = array<i64: 1, 128>}, {transform_indices = @transform_4, window_bounds = array<i64: 16, 128>}]} {
    %c0 = arith.constant 0 : index
    %c0_0 = arith.constant 0 : index
    %0 = vector.load %arg1[%c0, %c0_0] : memref<16x128xf32, #tpu.memory_space<vmem>>, vector<16x128xf32>
    %c0_1 = arith.constant 0 : index
    %c0_2 = arith.constant 0 : index
    %1 = vector.load %arg2[%c0_1, %c0_2] : memref<128x128xf32, #tpu.memory_space<vmem>>, vector<128x128xf32>
    %cst = arith.constant dense<0.000000e+00> : vector<16x128xf32>
    %2 = tpu.matmul %0, %1, %cst {dimension_numbers = #tpu.dot_dimension_numbers<[1], [0], [0], [1], [0, 0, 1, 1], [], []>} : vector<16x128xf32>, vector<128x128xf32>, vector<16x128xf32> -> vector<16x128xf32>
    %3 = math.tanh %2 : vector<16x128xf32>
    %c0_3 = arith.constant 0 : index
    %c0_4 = arith.constant 0 : index
    %4 = vector.load %arg3[%c0_3, %c0_4] : memref<128x128xf32, #tpu.memory_space<vmem>>, vector<128x128xf32>
    %cst_5 = arith.constant dense<0.000000e+00> : vector<16x128xf32>
    %5 = tpu.matmul %3, %4, %cst_5 {dimension_numbers = #tpu.dot_dimension_numbers<[1], [0], [0], [1], [0, 0, 1, 1], [], []>} : vector<16x128xf32>, vector<128x128xf32>, vector<16x128xf32> -> vector<16x128xf32>
    %c0_6 = arith.constant 0 : index
    %c0_7 = arith.constant 0 : index
    %6 = vector.load %arg4[%c0_6, %c0_7] : memref<1x128xf32, #tpu.memory_space<vmem>>, vector<1x128xf32>
    %7 = vector.broadcast %6 : vector<1x128xf32> to vector<16x128xf32>
    %8 = arith.addf %5, %7 : vector<16x128xf32>
    %c0_8 = arith.constant 0 : index
    %c0_9 = arith.constant 0 : index
    %9 = vector.load %arg5[%c0_8, %c0_9] : memref<16x128xf32, #tpu.memory_space<vmem>>, vector<16x128xf32>
    tpu.vector_store %arg5[%c0_8, %c0_9], %8 {strides = array<i32>} : memref<16x128xf32, #tpu.memory_space<vmem>>, vector<16x128xf32>,
    return
  }
  func.func @transform_0(%arg0: i32) -> (i32, i32) {
    %c0_i32 = arith.constant 0 : i32
    %c0_i32_0 = arith.constant 0 : i32
    return %arg0, %c0_i32 : i32, i32
  }
  func.func @transform_1(%arg0: i32) -> (i32, i32) {
    %c0_i32 = arith.constant 0 : i32
    %c0_i32_0 = arith.constant 0 : i32
    %c0_i32_1 = arith.constant 0 : i32
    return %c0_i32, %c0_i32_0 : i32, i32
  }
  func.func @transform_2(%arg0: i32) -> (i32, i32) {
    %c0_i32 = arith.constant 0 : i32
    %c0_i32_0 = arith.constant 0 : i32
    %c0_i32_1 = arith.constant 0 : i32
    return %c0_i32, %c0_i32_0 : i32, i32
  }
  func.func @transform_3(%arg0: i32) -> (i32, i32) {
    %c0_i32 = arith.constant 0 : i32
    %c0_i32_0 = arith.constant 0 : i32
    %c0_i32_1 = arith.constant 0 : i32
    return %c0_i32, %c0_i32_0 : i32, i32
  }
  func.func @transform_4(%arg0: i32) -> (i32, i32) {
    %c0_i32 = arith.constant 0 : i32
    %c0_i32_0 = arith.constant 0 : i32
    return %arg0, %c0_i32 : i32, i32
  }
}

</mosaic_0001>

<bundles_post_ra>
// kernel: tpu_custom_call.1
= control target key start
LH: loop header
LB: loop body
LE: loop exit
PB: predicated region body
PF: predicated region fallthrough
CT: control target
= control target key end

     0   :  { %9 = vsyncpa [#allocation3], 0  ;;  %s648_s0 = inlined_call_operand.hbm [shape: f32[16,128], index: 0, kind: input, shape index: {}]   ;;  %s649_s1 = inlined_call_operand.hbm [shape: f32[128,128], index: 1, kind: input, shape index: {}]   ;;  %s650_s2 = inlined_call_operand.hbm [shape: f32[128,128], index: 2, kind: input, shape index: {}]   ;;  %s651_s3 = inlined_call_operand.vmem [shape: f32[1,128], index: 3, kind: input, shape index: {}]   ;;  %s652_s4 = inlined_call_operand.hbm [shape: f32[16,128], index: 4, kind: output, shape index: {}]  }
   0x1   :  { %10 = vsyncpa [#allocation6], 0 }
   0x2   :  { %11 = vsyncpa [#allocation4], 0  ;;  %s547_s15 = smov [#allocation5]   ;;  %s548_s17 = smov [#allocation2]  }
   0x3   :  { %s29_s16 = sshll.u32 %s547_s15, 4  ;;  %s17_s18 = sshll.u32 %s548_s17, 4  ;;  %s30_s16 = int_to_ptr.vmem [resolvable:$true] %s29_s16  ;;  %s578_s18 = int_to_ptr.vmem [resolvable:$true] %s17_s18 }
   0x4   :  { %s453_s21 = scalar_lea.hbm %s649_s1, 2048 }
   0x5   :  { %p454_p0 = scmp.ne.s32.totalorder %s649_s1, %s453_s21  ;;  %p457_p1 = scmp.lt.u32.totalorder %s453_s21, %s649_s1 }
   0x7   :  { %p459_p2 = pnand %p457_p1, %p454_p0 }
   0x9   :  { %462 = shalt.err (!%p459_p2)
}
   0xa   :  { %s463_s26 = scalar_lea.vmem %s30_s16, 2048  ;;  %p468_p4 = scmp.lt.s32.totalorder %s30_s16, %s30_s16 }
   0xb   :  { %p464_p3 = scmp.ne.s32.totalorder %s30_s16, %s463_s26  ;;  %p469_p5 = scmp.lt.s32.totalorder %s463_s26, %s463_s26 }
   0xd   :  { %p470_p6 = por %p469_p5, %p468_p4 }
   0xf   :  { %p471_p7 = pnand %p470_p6, %p464_p3 }
  0x11   :  { %474 = shalt.err (!%p471_p7)
}
  0x12   :  { %s549_s27 = smov 128   ;;  %s550_s28 = smov 8  }
  0x13   :  { %35 = dma.hbm_to_vmem [thread:$0]  %s649_s1, 2048, %s30_s16, [#allocation6], %s549_s27, %s549_s27, %s550_s28  }
  0x14   :  { %s475_s7 = scalar_lea.hbm %s648_s0, 256 }
  0x15   :  { %p476_p8 = scmp.ne.s32.totalorder %s648_s0, %s475_s7  ;;  %p479_p9 = scmp.lt.u32.totalorder %s475_s7, %s648_s0 }
  0x17   :  { %p481_p10 = pnand %p479_p9, %p476_p8 }
  0x19   :  { %484 = shalt.err (!%p481_p10)
}
  0x1a   :  { %s485_s12 = scalar_lea.vmem %s578_s18, 256  ;;  %p490_p12 = scmp.lt.s32.totalorder %s578_s18, %s578_s18 }
  0x1b   :  { %p486_p11 = scmp.ne.s32.totalorder %s578_s18, %s485_s12  ;;  %p491_p13 = scmp.lt.s32.totalorder %s485_s12, %s485_s12 }
  0x1d   :  { %p492_p0 = por %p491_p13, %p490_p12 }
  0x1f   :  { %p493_p1 = pnand %p492_p0, %p486_p11 }
  0x21   :  { %496 = shalt.err (!%p493_p1)
}
  0x22   :  { %23 = dma.hbm_to_vmem [thread:$0]  %s648_s0, 256, %s578_s18, [#allocation3], %s549_s27, %s549_s27, %s550_s28  }
  0x23   :  { %s551_s14 = smov [#allocation7]   ;;  %s497_s19 = scalar_lea.hbm %s650_s2, 2048 }
  0x24   :  { %s41_s15 = sshll.u32 %s551_s14, 4  ;;  %p498_p2 = scmp.ne.s32.totalorder %s650_s2, %s497_s19  ;;  %s42_s15 = int_to_ptr.vmem [resolvable:$true] %s41_s15 }
  0x25   :  { %p501_p3 = scmp.lt.u32.totalorder %s497_s19, %s650_s2 }
  0x27   :  { %p503_p4 = pnand %p501_p3, %p498_p2 }
  0x29   :  { %506 = shalt.err (!%p503_p4)
}
  0x2a   :  { %s507_s24 = scalar_lea.vmem %s42_s15, 2048  ;;  %p512_p6 = scmp.lt.s32.totalorder %s42_s15, %s42_s15 }
  0x2b   :  { %p508_p5 = scmp.ne.s32.totalorder %s42_s15, %s507_s24  ;;  %p513_p7 = scmp.lt.s32.totalorder %s507_s24, %s507_s24 }
  0x2d   :  { %p514_p8 = por %p513_p7, %p512_p6 }
  0x2f   :  { %p515_p9 = pnand %p514_p8, %p508_p5 }
  0x31   :  { %518 = shalt.err (!%p515_p9)
}
  0x32   :  { %47 = dma.hbm_to_vmem [thread:$0]  %s650_s2, 2048, %s42_s15, [#allocation6], %s549_s27, %s549_s27, %s550_s28  }
  0x33   :  { %541 = dma.done.wait [#allocation3], 256  }
  0x34   :  { %542 = vsyncadd [#allocation3], 4294967040 }
  0x35   :  { %543 = dma.done.wait [#allocation6], 4096  }
  0x36   :  { %544 = vsyncadd [#allocation6], 4294963200  ;;  %v61_v0 = vld [vmem:[#allocation5] sm:$0xff]  ;;  %v62_v1 = vld [vmem:[#allocation5 + $0x8] sm:$0xff]  ;;  %s552_s26 = smov [#allocation8]  }
  0x37   :  { %v63_v2 = vld [vmem:[#allocation5 + $0x10] sm:$0xff]  ;;  %v379_v3 = vpack.c.bf16 %v62_v1, %v61_v0  ;;  %v64_v4 = vld [vmem:[#allocation5 + $0x18] sm:$0xff]  ;;  %v65_v6 = vld [vmem:[#allocation5 + $0x20] sm:$0xff]  ;;  %s259_s29 = sshll.u32 %s552_s26, 4  ;;  %s260_s29 = int_to_ptr.vmem [resolvable:$true] %s259_s29 }
  0x38   :  { %v383_v5 = vpack.c.bf16 %v64_v4, %v63_v2  ;;  %v66_v7 = vld [vmem:[#allocation5 + $0x28] sm:$0xff]  ;;  %v67_v9 = vld [vmem:[#allocation5 + $0x30] sm:$0xff]  ;;  %v68_v10 = vld [vmem:[#allocation5 + $0x38] sm:$0xff]  ;;  %s519_s30 = scalar_lea.vmem %s260_s29, 256  ;;  %p524_p11 = scmp.lt.s32.totalorder %s260_s29, %s260_s29 }
  0x39   :  { %380 = vmatprep.subr.bf16.mxu0 %v379_v3  ;;  %v387_v8 = vpack.c.bf16 %v66_v7, %v65_v6  ;;  %v59_v11 = vld [vmem:[#allocation2] sm:$0xff]  ;;  %v154_v12 = vld [vmem:[#allocation7] sm:$0xff]  ;;  %v155_v13 = vld [vmem:[#allocation7 + $0x8] sm:$0xff]  ;;  %v391_v20 = vpack.c.bf16 %v68_v10, %v67_v9  ;;  %p520_p10 = scmp.ne.s32.totalorder %s260_s29, %s519_s30  ;;  %p525_p12 = scmp.lt.s32.totalorder %s519_s30, %s519_s30 }
  0x3a   :  { %382 = vmatpush3.bf16.msra.mxu0 %v379_v3  ;;  %341 = vmatprep.mubr.f32.mxu0 %v59_v11  ;;  %v156_v14 = vld [vmem:[#allocation7 + $0x10] sm:$0xff]  ;;  %v411_v15 = vpack.c.bf16 %v155_v13, %v154_v12  ;;  %v157_v16 = vld [vmem:[#allocation7 + $0x18] sm:$0xff]  ;;  %v158_v18 = vld [vmem:[#allocation7 + $0x20] sm:$0xff] }
  0x3b   :  { %384 = vmatprep.subr.bf16.mxu0 %v383_v5  ;;  %v415_v17 = vpack.c.bf16 %v157_v16, %v156_v14  ;;  %v159_v19 = vld [vmem:[#allocation7 + $0x28] sm:$0xff]  ;;  %v69_v21 = vld [vmem:[#allocation5 + $0x40] sm:$0xff]  ;;  %v160_v24 = vld [vmem:[#allocation7 + $0x30] sm:$0xff]  ;;  %p526_p13 = por %p525_p12, %p524_p11 }
  0x3c   :  { %412 = vmatprep.subr.bf16.mxu1 %v411_v15  ;;  %v70_v22 = vld [vmem:[#allocation5 + $0x48] sm:$0xff]  ;;  %v419_v23 = vpack.c.bf16 %v159_v19, %v158_v18  ;;  %v161_v25 = vld [vmem:[#allocation7 + $0x38] sm:$0xff]  ;;  %v71_v27 = vld [vmem:[#allocation5 + $0x50] sm:$0xff] }
  0x3d   :  { %414 = vmatpush3.bf16.msra.mxu1 %v411_v15  ;;  %v395_v26 = vpack.c.bf16 %v70_v22, %v69_v21  ;;  %v72_v28 = vld [vmem:[#allocation5 + $0x58] sm:$0xff]  ;;  %v423_v29 = vpack.c.bf16 %v161_v25, %v160_v24  ;;  %v162_v30 = vld [vmem:[#allocation7 + $0x40] sm:$0xff]  ;;  %v163_v31 = vld [vmem:[#allocation7 + $0x48] sm:$0xff]  ;;  %p527_p0 = pnand %p526_p13, %p520_p10 }
  0x3e   :  { %386 = vmatpush3.bf16.msra.mxu0 %v383_v5  ;;  %416 = vmatprep.subr.bf16.mxu1 %v415_v17  ;;  %v399_v32 = vpack.c.bf16 %v72_v28, %v71_v27  ;;  %v73_v33 = vld [vmem:[#allocation5 + $0x60] sm:$0xff]  ;;  %v74_v34 = vld [vmem:[#allocation5 + $0x68] sm:$0xff]  ;;  %v427_v35 = vpack.c.bf16 %v163_v31, %v162_v30  ;;  %v75_v37 = vld [vmem:[#allocation5 + $0x70] sm:$0xff] }
  0x3f   :  { %388 = vmatprep.subr.bf16.mxu0 %v387_v8  ;;  %v403_v36 = vpack.c.bf16 %v74_v34, %v73_v33  ;;  %v76_v38 = vld [vmem:[#allocation5 + $0x78] sm:$0xff]  ;;  %v164_v41 = vld [vmem:[#allocation7 + $0x50] sm:$0xff]  ;;  %v166_v44 = vld [vmem:[#allocation7 + $0x60] sm:$0xff] }
  0x40   :  { %v407_v39 = vpack.c.bf16 %v76_v38, %v75_v37  ;;  %v60_v40 = vld [vmem:[#allocation2 + $0x8] sm:$0xff]  ;;  %v167_v45 = vld [vmem:[#allocation7 + $0x68] sm:$0xff]  ;;  %v168_v46 = vld [vmem:[#allocation7 + $0x70] sm:$0xff] }
  0x41   :  { %418 = vmatpush3.bf16.msra.mxu1 %v415_v17  ;;  %v165_v42 = vld [vmem:[#allocation7 + $0x58] sm:$0xff]  ;;  %v435_v47 = vpack.c.bf16 %v167_v45, %v166_v44  ;;  %v272_v54 = vld [vmem:[%s651_s3] ss:$0 sm:$0xff] }
  0x42   :  { %390 = vmatpush3.bf16.msra.mxu0 %v387_v8  ;;  %420 = vmatprep.subr.bf16.mxu1 %v419_v23  ;;  %v431_v43 = vpack.c.bf16 %v165_v42, %v164_v41  ;;  %v169_v48 = vld [vmem:[#allocation7 + $0x78] sm:$0xff] }
  0x43   :  { %392 = vmatprep.subr.bf16.mxu0 %v391_v20  ;;  %v439_v49 = vpack.c.bf16 %v169_v48, %v168_v46 }
  0x45   :  { %422 = vmatpush3.bf16.msra.mxu1 %v419_v23 }
  0x46   :  { %394 = vmatpush3.bf16.msra.mxu0 %v391_v20  ;;  %424 = vmatprep.subr.bf16.mxu1 %v423_v29 }
  0x47   :  { %396 = vmatprep.subr.bf16.mxu0 %v395_v26 }
  0x49   :  { %426 = vmatpush3.bf16.msra.mxu1 %v423_v29 }
  0x4a   :  { %398 = vmatpush3.bf16.msra.mxu0 %v395_v26  ;;  %428 = vmatprep.subr.bf16.mxu1 %v427_v35 }
  0x4b   :  { %400 = vmatprep.subr.bf16.mxu0 %v399_v32 }
  0x4d   :  { %430 = vmatpush3.bf16.msra.mxu1 %v427_v35 }
  0x4e   :  { %402 = vmatpush3.bf16.msra.mxu0 %v399_v32  ;;  %432 = vmatprep.subr.bf16.mxu1 %v431_v43 }
  0x4f   :  { %404 = vmatprep.subr.bf16.mxu0 %v403_v36 }
  0x51   :  { %434 = vmatpush3.bf16.msra.mxu1 %v431_v43 }
  0x52   :  { %406 = vmatpush3.bf16.msra.mxu0 %v403_v36  ;;  %436 = vmatprep.subr.bf16.mxu1 %v435_v47 }
  0x53   :  { %408 = vmatprep.subr.bf16.mxu0 %v407_v39 }
  0x55   :  { %438 = vmatpush3.bf16.msra.mxu1 %v435_v47 }
  0x56   :  { %410 = vmatpush3.bf16.msra.mxu0 %v407_v39  ;;  %440 = vmatprep.subr.bf16.mxu1 %v439_v49 }
  0x59   :  { %342 = vmatmul.mubr.f32.vlgmr.msra.gmra.mrb[0].mxu0 %v60_v40  ;;  %442 = vmatpush3.bf16.msra.mxu1 %v439_v49 }
 0x12c   :  { %v343_v50 = vpop.f32.mrb[0].mxu0 }
 0x12d   :  { %v143_v51 = vpop.f32.mrb[1].mxu0 }
 0x12e   :  { %449 = vtanh.f32 %v143_v51 }
 0x12f   :  { %451 = vtanh.f32 %v343_v50 }
 0x138   :  { %v450_v52 = vpop.eup %449 }
 0x139   :  { %v452_v53 = vpop.eup %451  ;;  %376 = vmatprep.mubr.f32.mxu1 %v450_v52 }
 0x13a   :  { %377 = vmatmul.mubr.f32.vlgmr.msra.gmra.mrb[0].mxu1 %v452_v53 }
 0x20d   :  { %v378_v55 = vpop.f32.mrb[0].mxu1 }
 0x20e   :  { %v249_v56 = vadd.f32 %v378_v55, %v272_v54  ;;  %v243_v57 = vpop.f32.mrb[1].mxu1 }
 0x20f   :  { %v244_v58 = vadd.f32 %v272_v54, %v243_v57 }
 0x210   :  { %253 = vst [vmem:[#allocation8 + $0x8] sm:$0xff] %v249_v56 }
 0x211   :  { %252 = vst [vmem:[#allocation8] sm:$0xff] %v244_v58 }
 0x212   :  { %530 = shalt.err (!%p527_p0)
}
 0x213   :  { %s531_s3 = scalar_lea.hbm %s652_s4, 256 }
 0x214   :  { %p532_p1 = scmp.ne.s32.totalorder %s652_s4, %s531_s3  ;;  %p535_p2 = scmp.lt.u32.totalorder %s531_s3, %s652_s4 }
 0x216   :  { %p537_p3 = pnand %p535_p2, %p532_p1 }
 0x218   :  { %540 = shalt.err (!%p537_p3)
}
 0x219   :  { %265 = dma.vmem_to_hbm [thread:$0]  %s260_s29, 256, %s652_s4, [#allocation4], %s549_s27, %s549_s27, %s550_s28  }
 0x21a   :  { %545 = dma.done.wait [#allocation4], 256  }
 0x21b   :  { %546 = vsyncadd [#allocation4], 4294967040 }
 0x21c   :  { %269 = vsyncpa [#allocation3], 1 }
 0x21d   :  { %270 = vsyncpa [#allocation6], 1 }
 0x21e   :  { %271 = vsyncpa [#allocation4], 1 }

// kernel: tpu_custom_call.1
= control target key start
LH: loop header
LB: loop body
LE: loop exit
PB: predicated region body
PF: predicated region fallthrough
CT: control target
= control target key end

     0   :  { %9 = vsyncpa [#allocation3], 0  ;;  %s648_s0 = inlined_call_operand.hbm [shape: f32[16,128], index: 0, kind: input, shape index: {}]   ;;  %s649_s1 = inlined_call_operand.hbm [shape: f32[128,128], index: 1, kind: input, shape index: {}]   ;;  %s650_s2 = inlined_call_operand.hbm [shape: f32[128,128], index: 2, kind: input, shape index: {}]   ;;  %s651_s3 = inlined_call_operand.vmem [shape: f32[1,128], index: 3, kind: input, shape index: {}]   ;;  %s652_s4 = inlined_call_operand.hbm [shape: f32[16,128], index: 4, kind: output, shape index: {}]  }
   0x1   :  { %10 = vsyncpa [#allocation6], 0 }
   0x2   :  { %11 = vsyncpa [#allocation4], 0  ;;  %s547_s15 = smov [#allocation5]   ;;  %s548_s17 = smov [#allocation2]  }
   0x3   :  { %s29_s16 = sshll.u32 %s547_s15, 4  ;;  %s17_s18 = sshll.u32 %s548_s17, 4  ;;  %s30_s16 = int_to_ptr.vmem [resolvable:$true] %s29_s16  ;;  %s578_s18 = int_to_ptr.vmem [resolvable:$true] %s17_s18 }
   0x4   :  { %s453_s21 = scalar_lea.hbm %s649_s1, 2048 }
   0x5   :  { %p454_p0 = scmp.ne.s32.totalorder %s649_s1, %s453_s21  ;;  %p457_p1 = scmp.lt.u32.totalorder %s453_s21, %s649_s1 }
   0x7   :  { %p459_p2 = pnand %p457_p1, %p454_p0 }
   0x9   :  { %462 = shalt.err (!%p459_p2)
}
   0xa   :  { %s463_s26 = scalar_lea.vmem %s30_s16, 2048  ;;  %p468_p4 = scmp.lt.s32.totalorder %s30_s16, %s30_s16 }
   0xb   :  { %p464_p3 = scmp.ne.s32.totalorder %s30_s16, %s463_s26  ;;  %p469_p5 = scmp.lt.s32.totalorder %s463_s26, %s463_s26 }
   0xd   :  { %p470_p6 = por %p469_p5, %p468_p4 }
   0xf   :  { %p471_p7 = pnand %p470_p6, %p464_p3 }
  0x11   :  { %474 = shalt.err (!%p471_p7)
}
  0x12   :  { %s549_s27 = smov 128   ;;  %s550_s28 = smov 8  }
  0x13   :  { %35 = dma.hbm_to_vmem [thread:$0]  %s649_s1, 2048, %s30_s16, [#allocation6], %s549_s27, %s549_s27, %s550_s28  }
  0x14   :  { %s475_s7 = scalar_lea.hbm %s648_s0, 256 }
  0x15   :  { %p476_p8 = scmp.ne.s32.totalorder %s648_s0, %s475_s7  ;;  %p479_p9 = scmp.lt.u32.totalorder %s475_s7, %s648_s0 }
  0x17   :  { %p481_p10 = pnand %p479_p9, %p476_p8 }
  0x19   :  { %484 = shalt.err (!%p481_p10)
}
  0x1a   :  { %s485_s12 = scalar_lea.vmem %s578_s18, 256  ;;  %p490_p12 = scmp.lt.s32.totalorder %s578_s18, %s578_s18 }
  0x1b   :  { %p486_p11 = scmp.ne.s32.totalorder %s578_s18, %s485_s12  ;;  %p491_p13 = scmp.lt.s32.totalorder %s485_s12, %s485_s12 }
  0x1d   :  { %p492_p0 = por %p491_p13, %p490_p12 }
  0x1f   :  { %p493_p1 = pnand %p492_p0, %p486_p11 }
  0x21   :  { %496 = shalt.err (!%p493_p1)
}
  0x22   :  { %23 = dma.hbm_to_vmem [thread:$0]  %s648_s0, 256, %s578_s18, [#allocation3], %s549_s27, %s549_s27, %s550_s28  }
  0x23   :  { %s551_s14 = smov [#allocation7]   ;;  %s497_s19 = scalar_lea.hbm %s650_s2, 2048 }
  0x24   :  { %s41_s15 = sshll.u32 %s551_s14, 4  ;;  %p498_p2 = scmp.ne.s32.totalorder %s650_s2, %s497_s19  ;;  %s42_s15 = int_to_ptr.vmem [resolvable:$true] %s41_s15 }
  0x25   :  { %p501_p3 = scmp.lt.u32.totalorder %s497_s19, %s650_s2 }
  0x27   :  { %p503_p4 = pnand %p501_p3, %p498_p2 }
  0x29   :  { %506 = shalt.err (!%p503_p4)
}
  0x2a   :  { %s507_s24 = scalar_lea.vmem %s42_s15, 2048  ;;  %p512_p6 = scmp.lt.s32.totalorder %s42_s15, %s42_s15 }
  0x2b   :  { %p508_p5 = scmp.ne.s32.totalorder %s42_s15, %s507_s24  ;;  %p513_p7 = scmp.lt.s32.totalorder %s507_s24, %s507_s24 }
  0x2d   :  { %p514_p8 = por %p513_p7, %p512_p6 }
  0x2f   :  { %p515_p9 = pnand %p514_p8, %p508_p5 }
  0x31   :  { %518 = shalt.err (!%p515_p9)
}
  0x32   :  { %47 = dma.hbm_to_vmem [thread:$0]  %s650_s2, 2048, %s42_s15, [#allocation6], %s549_s27, %s549_s27, %s550_s28  }
  0x33   :  { %541 = dma.done.wait [#allocation3], 256  }
  0x34   :  { %542 = vsyncadd [#allocation3], 4294967040 }
  0x35   :  { %543 = dma.done.wait [#allocation6], 4096  }
  0x36   :  { %544 = vsyncadd [#allocation6], 4294963200  ;;  %v61_v0 = vld [vmem:[#allocation5] sm:$0xff]  ;;  %v62_v1 = vld [vmem:[#allocation5 + $0x8] sm:$0xff]  ;;  %s552_s26 = smov [#allocation8]  }
  0x37   :  { %v63_v2 = vld [vmem:[#allocation5 + $0x10] sm:$0xff]  ;;  %v379_v3 = vpack.c.bf16 %v62_v1, %v61_v0  ;;  %v64_v4 = vld [vmem:[#allocation5 + $0x18] sm:$0xff]  ;;  %v65_v6 = vld [vmem:[#allocation5 + $0x20] sm:$0xff]  ;;  %s259_s29 = sshll.u32 %s552_s26, 4  ;;  %s260_s29 = int_to_ptr.vmem [resolvable:$true] %s259_s29 }
  0x38   :  { %v383_v5 = vpack.c.bf16 %v64_v4, %v63_v2  ;;  %v66_v7 = vld [vmem:[#allocation5 + $0x28] sm:$0xff]  ;;  %v67_v9 = vld [vmem:[#allocation5 + $0x30] sm:$0xff]  ;;  %v68_v10 = vld [vmem:[#allocation5 + $0x38] sm:$0xff]  ;;  %s519_s30 = scalar_lea.vmem %s260_s29, 256  ;;  %p524_p11 = scmp.lt.s32.totalorder %s260_s29, %s260_s29 }
  0x39   :  { %380 = vmatprep.subr.bf16.mxu0 %v379_v3  ;;  %v387_v8 = vpack.c.bf16 %v66_v7, %v65_v6  ;;  %v59_v11 = vld [vmem:[#allocation2] sm:$0xff]  ;;  %v154_v12 = vld [vmem:[#allocation7] sm:$0xff]  ;;  %v155_v13 = vld [vmem:[#allocation7 + $0x8] sm:$0xff]  ;;  %v391_v20 = vpack.c.bf16 %v68_v10, %v67_v9  ;;  %p520_p10 = scmp.ne.s32.totalorder %s260_s29, %s519_s30  ;;  %p525_p12 = scmp.lt.s32.totalorder %s519_s30, %s519_s30 }
  0x3a   :  { %382 = vmatpush3.bf16.msra.mxu0 %v379_v3  ;;  %341 = vmatprep.mubr.f32.mxu0 %v59_v11  ;;  %v156_v14 = vld [vmem:[#allocation7 + $0x10] sm:$0xff]  ;;  %v411_v15 = vpack.c.bf16 %v155_v13, %v154_v12  ;;  %v157_v16 = vld [vmem:[#allocation7 + $0x18] sm:$0xff]  ;;  %v158_v18 = vld [vmem:[#allocation7 + $0x20] sm:$0xff] }
  0x3b   :  { %384 = vmatprep.subr.bf16.mxu0 %v383_v5  ;;  %v415_v17 = vpack.c.bf16 %v157_v16, %v156_v14  ;;  %v159_v19 = vld [vmem:[#allocation7 + $0x28] sm:$0xff]  ;;  %v69_v21 = vld [vmem:[#allocation5 + $0x40] sm:$0xff]  ;;  %v160_v24 = vld [vmem:[#allocation7 + $0x30] sm:$0xff]  ;;  %p526_p13 = por %p525_p12, %p524_p11 }
  0x3c   :  { %412 = vmatprep.subr.bf16.mxu1 %v411_v15  ;;  %v70_v22 = vld [vmem:[#allocation5 + $0x48] sm:$0xff]  ;;  %v419_v23 = vpack.c.bf16 %v159_v19, %v158_v18  ;;  %v161_v25 = vld [vmem:[#allocation7 + $0x38] sm:$0xff]  ;;  %v71_v27 = vld [vmem:[#allocation5 + $0x50] sm:$0xff] }
  0x3d   :  { %414 = vmatpush3.bf16.msra.mxu1 %v411_v15  ;;  %v395_v26 = vpack.c.bf16 %v70_v22, %v69_v21  ;;  %v72_v28 = vld [vmem:[#allocation5 + $0x58] sm:$0xff]  ;;  %v423_v29 = vpack.c.bf16 %v161_v25, %v160_v24  ;;  %v162_v30 = vld [vmem:[#allocation7 + $0x40] sm:$0xff]  ;;  %v163_v31 = vld [vmem:[#allocation7 + $0x48] sm:$0xff]  ;;  %p527_p0 = pnand %p526_p13, %p520_p10 }
  0x3e   :  { %386 = vmatpush3.bf16.msra.mxu0 %v383_v5  ;;  %416 = vmatprep.subr.bf16.mxu1 %v415_v17  ;;  %v399_v32 = vpack.c.bf16 %v72_v28, %v71_v27  ;;  %v73_v33 = vld [vmem:[#allocation5 + $0x60] sm:$0xff]  ;;  %v74_v34 = vld [vmem:[#allocation5 + $0x68] sm:$0xff]  ;;  %v427_v35 = vpack.c.bf16 %v163_v31, %v162_v30  ;;  %v75_v37 = vld [vmem:[#allocation5 + $0x70] sm:$0xff] }
  0x3f   :  { %388 = vmatprep.subr.bf16.mxu0 %v387_v8  ;;  %v403_v36 = vpack.c.bf16 %v74_v34, %v73_v33  ;;  %v76_v38 = vld [vmem:[#allocation5 + $0x78] sm:$0xff]  ;;  %v164_v41 = vld [vmem:[#allocation7 + $0x50] sm:$0xff]  ;;  %v166_v44 = vld [vmem:[#allocation7 + $0x60] sm:$0xff] }
  0x40   :  { %v407_v39 = vpack.c.bf16 %v76_v38, %v75_v37  ;;  %v60_v40 = vld [vmem:[#allocation2 + $0x8] sm:$0xff]  ;;  %v167_v45 = vld [vmem:[#allocation7 + $0x68] sm:$0xff]  ;;  %v168_v46 = vld [vmem:[#allocation7 + $0x70] sm:$0xff] }
  0x41   :  { %418 = vmatpush3.bf16.msra.mxu1 %v415_v17  ;;  %v165_v42 = vld [vmem:[#allocation7 + $0x58] sm:$0xff]  ;;  %v435_v47 = vpack.c.bf16 %v167_v45, %v166_v44  ;;  %v272_v54 = vld [vmem:[%s651_s3] ss:$0 sm:$0xff] }
  0x42   :  { %390 = vmatpush3.bf16.msra.mxu0 %v387_v8  ;;  %420 = vmatprep.subr.bf16.mxu1 %v419_v23  ;;  %v431_v43 = vpack.c.bf16 %v165_v42, %v164_v41  ;;  %v169_v48 = vld [vmem:[#allocation7 + $0x78] sm:$0xff] }
  0x43   :  { %392 = vmatprep.subr.bf16.mxu0 %v391_v20  ;;  %v439_v49 = vpack.c.bf16 %v169_v48, %v168_v46 }
  0x45   :  { %422 = vmatpush3.bf16.msra.mxu1 %v419_v23 }
  0x46   :  { %394 = vmatpush3.bf16.msra.mxu0 %v391_v20  ;;  %424 = vmatprep.subr.bf16.mxu1 %v423_v29 }
  0x47   :  { %396 = vmatprep.subr.bf16.mxu0 %v395_v26 }
  0x49   :  { %426 = vmatpush3.bf16.msra.mxu1 %v423_v29 }
  0x4a   :  { %398 = vmatpush3.bf16.msra.mxu0 %v395_v26  ;;  %428 = vmatprep.subr.bf16.mxu1 %v427_v35 }
  0x4b   :  { %400 = vmatprep.subr.bf16.mxu0 %v399_v32 }
  0x4d   :  { %430 = vmatpush3.bf16.msra.mxu1 %v427_v35 }
  0x4e   :  { %402 = vmatpush3.bf16.msra.mxu0 %v399_v32  ;;  %432 = vmatprep.subr.bf16.mxu1 %v431_v43 }
  0x4f   :  { %404 = vmatprep.subr.bf16.mxu0 %v403_v36 }
  0x51   :  { %434 = vmatpush3.bf16.msra.mxu1 %v431_v43 }
  0x52   :  { %406 = vmatpush3.bf16.msra.mxu0 %v403_v36  ;;  %436 = vmatprep.subr.bf16.mxu1 %v435_v47 }
  0x53   :  { %408 = vmatprep.subr.bf16.mxu0 %v407_v39 }
  0x55   :  { %438 = vmatpush3.bf16.msra.mxu1 %v435_v47 }
  0x56   :  { %410 = vmatpush3.bf16.msra.mxu0 %v407_v39  ;;  %440 = vmatprep.subr.bf16.mxu1 %v439_v49 }
  0x59   :  { %342 = vmatmul.mubr.f32.vlgmr.msra.gmra.mrb[0].mxu0 %v60_v40  ;;  %442 = vmatpush3.bf16.msra.mxu1 %v439_v49 }
 0x12c   :  { %v343_v50 = vpop.f32.mrb[0].mxu0 }
 0x12d   :  { %v143_v51 = vpop.f32.mrb[1].mxu0 }
 0x12e   :  { %449 = vtanh.f32 %v143_v51 }
 0x12f   :  { %451 = vtanh.f32 %v343_v50 }
 0x138   :  { %v450_v52 = vpop.eup %449 }
 0x139   :  { %v452_v53 = vpop.eup %451  ;;  %376 = vmatprep.mubr.f32.mxu1 %v450_v52 }
 0x13a   :  { %377 = vmatmul.mubr.f32.vlgmr.msra.gmra.mrb[0].mxu1 %v452_v53 }
 0x20d   :  { %v378_v55 = vpop.f32.mrb[0].mxu1 }
 0x20e   :  { %v249_v56 = vadd.f32 %v378_v55, %v272_v54  ;;  %v243_v57 = vpop.f32.mrb[1].mxu1 }
 0x20f   :  { %v244_v58 = vadd.f32 %v272_v54, %v243_v57 }
 0x210   :  { %253 = vst [vmem:[#allocation8 + $0x8] sm:$0xff] %v249_v56 }
 0x211   :  { %252 = vst [vmem:[#allocation8] sm:$0xff] %v244_v58 }
 0x212   :  { %530 = shalt.err (!%p527_p0)
}
 0x213   :  { %s531_s3 = scalar_lea.hbm %s652_s4, 256 }
 0x214   :  { %p532_p1 = scmp.ne.s32.totalorder %s652_s4, %s531_s3  ;;  %p535_p2 = scmp.lt.u32.totalorder %s531_s3, %s652_s4 }
 0x216   :  { %p537_p3 = pnand %p535_p2, %p532_p1 }
 0x218   :  { %540 = shalt.err (!%p537_p3)
}
 0x219   :  { %265 = dma.vmem_to_hbm [thread:$0]  %s260_s29, 256, %s652_s4, [#allocation4], %s549_s27, %s549_s27, %s550_s28  }
 0x21a   :  { %545 = dma.done.wait [#allocation4], 256  }
 0x21b   :  { %546 = vsyncadd [#allocation4], 4294967040 }
 0x21c   :  { %269 = vsyncpa [#allocation3], 1 }
 0x21d   :  { %270 = vsyncpa [#allocation6], 1 }
 0x21e   :  { %271 = vsyncpa [#allocation4], 1 }

</bundles_post_ra>
